<compile_context>
chip_gen: v7x
topology: tpu7x:2x2x1
jax: 0.10.0
libtpu: 0.0.40
codegen_flags: <defaults>
</compile_context>

<pallas_src>
import math

import jax
import jax.numpy as jnp
from jax import lax
from jax.experimental import pallas as pl
from jax.experimental.pallas import tpu as pltpu


def convglu_kernel(x_ref, halo_ref, dw_ref, pw_ref, shift_ref, out_ref, hbuf_ref):
    """One (batch-tile, time-tile) block per grid step.

    x_ref:     (Bb, C, Tt)        activations (also the residual)
    halo_ref:  (Bb, 1, C, 2*pad)  [left halo | right halo] columns for this tile
    dw_ref:    (C, K)             depthwise weights (f32)
    pw_ref:    (2C, C)            pointwise weights, BN scale folded (f32 or bf16)
    shift_ref: (2C, 1)            folded shift = beta + inv*(pw_bias - running_mean)
    out_ref:   (Bb, C, Tt)
    hbuf_ref:  (C, Tt) f32 scratch; only its first 2*pad columns are ever read.
    """
    Bb, C, Tt = x_ref.shape
    K = dw_ref.shape[1]
    pad = K // 2
    approx_recip = jnp.dtype(pw_ref.dtype) == jnp.dtype(jnp.bfloat16)

    # Per-tap edge masks, hoisted out of the per-batch loop so the VPU compare
    # cost is shared across the Bb batch elements of this block.
    col = lax.broadcasted_iota(jnp.int32, (C, Tt), 1)
    edge_mask = {}
    for j in range(K):
        s = pad - j
        if s > 0:
            edge_mask[j] = col < s                 # left out-of-tile columns
        elif s < 0:
            edge_mask[j] = col >= (Tt + s)         # right out-of-tile columns

    for bi in range(Bb):
        x = x_ref[bi].astype(jnp.float32)                          # (C, Tt)

        # Place the 2*pad halo columns at the front of the scratch tile; the
        # per-tap halo rolls below only ever read those columns under the edge
        # mask, so the rest of the scratch may stay uninitialized.
        hbuf_ref[:, 0:2 * pad] = halo_ref[bi, 0].astype(jnp.float32)
        hb = hbuf_ref[...]

        # Depthwise 'same' FIR: tap j reads column t + j - pad.  Non-center taps
        # are a lane rotation (XLU, has slack); the <= pad out-of-tile columns
        # are sourced from the halo with one select per tap.
        acc = x * dw_ref[:, pad:pad + 1]                           # center tap
        for j in range(K):
            if j == pad:
                continue
            s = pad - j
            tap = pltpu.roll(x, s % Tt, axis=1)
            halo_tap = pltpu.roll(hb, (Tt - j) % Tt, axis=1)
            tap = jnp.where(edge_mask[j], halo_tap, tap)
            acc = acc + tap * dw_ref[:, j:j + 1]

        # Pointwise (1x1) conv with folded bias + BatchNorm, always on the MXU.
        # pw_ref is bf16 when the activation pipeline is bf16 (v6e/v7x native).
        y = jnp.dot(pw_ref[...], acc.astype(pw_ref.dtype),
                    preferred_element_type=jnp.float32)            # (2C, Tt)
        y = y + shift_ref[...]

        # GLU(dim=1) + residual; gate = 1/(1+exp(-g)) on the EUP, no VPU divide.
        a = y[:C, :]
        g = y[C:, :]
        gate = pl.reciprocal(1.0 + jnp.exp(-g), approx=approx_recip)
        out_ref[bi] = (x + a * gate).astype(out_ref.dtype)


def _round_up(v, m):
    return (v + m - 1) // m * m


def _choose_tile_t(T, C, tile_t):
    if tile_t is not None:
        Tt = int(tile_t)
    else:
        if C <= 256:
            cap = 1024
        elif C <= 1024:
            cap = 512
        elif C <= 2048:
            cap = 256
        else:
            cap = 128
        Tt = min(cap, _round_up(T, 128))
    assert Tt % 128 == 0, "time tile must be a multiple of 128 lanes"
    return Tt, _round_up(T, Tt)


def _choose_batch_tile(B, C, Tt, nt, itemsize):
    for cand in range(min(B, 8), 0, -1):
        if B % cand:
            continue
        if cand * C * Tt * itemsize > (1 << 20):      # keep per-step blocks small
            continue
        if (B // cand) * nt < 2 and B * nt >= 2:      # keep >=2 steps for megacore
            continue
        return cand
    return 1


def convglu_pallas(x, dw, pw, pwb, gamma, beta, rmean, rvar, eps=1e-5,
                   activation_dtype=None, tile_t=None):
    """ConvGLU forward (eval mode).

    x: (B,C,T)  dw: (C,K)  pw: (2C,C)  pwb/gamma/beta/rmean/rvar: (2C,)
    activation_dtype: HBM dtype for x/out (e.g. jnp.bfloat16); kernel math is f32.
    """
    B, C, T = x.shape
    K = dw.shape[1]
    C2 = 2 * C
    pad = K // 2
    assert K % 2 == 1 and pad >= 1, "assumes odd kernel_size >= 3 (PyTorch 'same' padding)"
    assert pw.shape == (C2, C)

    act_dtype = jnp.dtype(activation_dtype) if activation_dtype is not None else jnp.dtype(x.dtype)
    mxu_dtype = jnp.bfloat16 if act_dtype == jnp.dtype(jnp.bfloat16) else jnp.float32
    act_bytes = act_dtype.itemsize

    Tt, T_pad = _choose_tile_t(T, C, tile_t)
    nt = T_pad // Tt
    Bb = _choose_batch_tile(B, C, Tt, nt, act_bytes)
    nb = B // Bb

    xq = x.astype(act_dtype)
    if T_pad != T:
        xq = jnp.pad(xq, ((0, 0), (0, 0), (0, T_pad - T)))

    # Per-tile halo columns [left | right] (zeros at the sequence boundaries):
    # a tiny side array (2*pad columns per tile) instead of a full padded copy.
    xp2 = jnp.pad(xq, ((0, 0), (0, 0), (pad, pad)))
    starts = jnp.arange(nt) * Tt
    taps = jnp.arange(pad)
    idx = jnp.concatenate([starts[:, None] + taps[None, :],
                           (starts + Tt + pad)[:, None] + taps[None, :]], axis=1)
    halo = jnp.take(xp2, idx.reshape(-1), axis=2)
    halo = halo.reshape(B, C, nt, 2 * pad).transpose(0, 2, 1, 3)   # (B, nt, C, 2*pad)

    # Host-side fold of BatchNorm (running stats) + pointwise bias into weights.
    inv = gamma / jnp.sqrt(rvar + eps)
    pw_fold = (pw * inv[:, None]).astype(mxu_dtype)                # (2C, C)
    shift = (beta + inv * (pwb - rmean))[:, None].astype(jnp.float32)
    dw_f = dw.astype(jnp.float32)

    flops = B * T_pad * (2 * C * K + 2 * C2 * C + 8 * C)
    transcendentals = 2 * B * C * T_pad                            # exp + reciprocal
    bytes_accessed = (act_bytes * (2 * B * C * T_pad + B * nt * C * 2 * pad)
                      + 4 * (C * K + C2) + pw_fold.dtype.itemsize * C2 * C)

    out = pl.pallas_call(
        convglu_kernel,
        out_shape=jax.ShapeDtypeStruct((B, C, T_pad), act_dtype),
        grid_spec=pltpu.PrefetchScalarGridSpec(
            num_scalar_prefetch=0,
            grid=(nb, nt),
            in_specs=[
                pl.BlockSpec((Bb, C, Tt), lambda b, t: (b, 0, t)),
                pl.BlockSpec((Bb, 1, C, 2 * pad), lambda b, t: (b, t, 0, 0)),
                pl.BlockSpec((C, K), lambda b, t: (0, 0)),
                pl.BlockSpec((C2, C), lambda b, t: (0, 0)),
                pl.BlockSpec((C2, 1), lambda b, t: (0, 0)),
            ],
            out_specs=pl.BlockSpec((Bb, C, Tt), lambda b, t: (b, 0, t)),
            scratch_shapes=[pltpu.VMEM((C, Tt), jnp.float32)],
        ),
        compiler_params=pltpu.CompilerParams(
            dimension_semantics=("parallel", "parallel"),
            # <= v7x's 64 MiB physical VMEM; T/B tiling keeps actual usage well below.
            vmem_limit_bytes=48 * 1024 * 1024,
        ),
        cost_estimate=pl.CostEstimate(
            flops=int(flops),
            transcendentals=int(transcendentals),
            bytes_accessed=int(bytes_accessed),
        ),
    )(xq, halo, dw_f, pw_fold, shift)

    if T_pad != T:
        out = out[:, :, :T]
    return out


def ref_forward(x, dw, pw, pwb, gamma, beta, rmean, rvar, eps=1e-5):
    """Pure-JAX reference of ConvGLU.forward (eval mode)."""
    B, C, T = x.shape
    K = dw.shape[1]
    pad = K // 2
    xp = jnp.pad(x, ((0, 0), (0, 0), (pad, pad)))
    y = jnp.zeros((B, C, T), jnp.float32)
    for j in range(K):
        y = y + xp[:, :, j:j + T] * dw[None, :, j:j + 1]
    z = jnp.einsum("oc,bct->bot", pw, y) + pwb[None, :, None]
    z = (z - rmean[None, :, None]) / jnp.sqrt(rvar[None, :, None] + eps)
    z = z * gamma[None, :, None] + beta[None, :, None]
    a, b = z[:, :C], z[:, C:]
    return x + a * jax.nn.sigmoid(b)


if __name__ == "__main__":
    eps = 1e-5
    dropout = 0.0

    B, C, T, K = 2, 16, 384, 7
    C2 = 2 * C

    key = jax.random.PRNGKey(0)
    kx, kdw, kpw, kg, kb, km, kv = jax.random.split(key, 7)

    x = jax.random.normal(kx, (B, C, T), jnp.float32)

    # ConvSeparable params (PyTorch-style init scales, deterministic keys).
    dw_std = math.sqrt(4.0 * (1.0 - dropout) / (K * C))
    pw_std = math.sqrt(1.0 / C)
    dw = dw_std * jax.random.normal(kdw, (C, K), jnp.float32)     # depthwise (C,1,K) squeezed
    pw = pw_std * jax.random.normal(kpw, (C2, C), jnp.float32)    # pointwise (2C,C,1) squeezed
    pwb = jnp.zeros((C2,), jnp.float32)

    # BatchNorm1d(2C) affine + running stats (eval mode).
    gamma = 1.0 + 0.1 * jax.random.normal(kg, (C2,), jnp.float32)
    beta = 0.1 * jax.random.normal(kb, (C2,), jnp.float32)
    rmean = 0.1 * jax.random.normal(km, (C2,), jnp.float32)
    rvar = 1.0 + 0.1 * jax.random.uniform(kv, (C2,), jnp.float32)

    ref = ref_forward(x, dw, pw, pwb, gamma, beta, rmean, rvar, eps)

    # 1) f32 activations, T tiled into 3 blocks of 128 -> exercises the halo path.
    out = convglu_pallas(x, dw, pw, pwb, gamma, beta, rmean, rvar, eps, tile_t=128)
    out = jax.block_until_ready(out)
    assert out.shape == (B, C, T)
    err = float(jnp.max(jnp.abs(out - ref)))
    assert jnp.allclose(out, ref, atol=5e-4, rtol=5e-4), f"f32 tiled: max abs err {err}"

    # 2) bf16 HBM activations (mem-bound regime win); kernel math stays f32.
    out_bf = convglu_pallas(x, dw, pw, pwb, gamma, beta, rmean, rvar, eps,
                            activation_dtype=jnp.bfloat16, tile_t=128)
    out_bf = jax.block_until_ready(out_bf).astype(jnp.float32)
    err_bf = float(jnp.max(jnp.abs(out_bf - ref)))
    assert jnp.allclose(out_bf, ref, atol=0.15, rtol=0.1), f"bf16 I/O: max abs err {err_bf}"

    # 3) T not a multiple of 128 -> exercises the lane-padding path (single tile).
    T3 = 200
    x3 = x[:, :, :T3]
    ref3 = ref_forward(x3, dw, pw, pwb, gamma, beta, rmean, rvar, eps)
    out3 = convglu_pallas(x3, dw, pw, pwb, gamma, beta, rmean, rvar, eps)
    out3 = jax.block_until_ready(out3)
    assert out3.shape == (B, C, T3)
    err3 = float(jnp.max(jnp.abs(out3 - ref3)))
    assert jnp.allclose(out3, ref3, atol=5e-4, rtol=5e-4), f"f32 padded-T: max abs err {err3}"

    print("KERNEL_OK")
</pallas_src>

<mosaic_0001>
module attributes {stable_mosaic.version = 11 : i64} {
  func.func @convglu_kernel(%arg0: i32, %arg1: i32, %arg2: memref<2x16x128xf32, #tpu.memory_space<vmem>>, %arg3: memref<2x1x16x6xf32, #tpu.memory_space<vmem>>, %arg4: memref<16x7xf32, #tpu.memory_space<vmem>>, %arg5: memref<32x16xf32, #tpu.memory_space<vmem>>, %arg6: memref<32x1xf32, #tpu.memory_space<vmem>>, %arg7: memref<2x16x128xf32, #tpu.memory_space<vmem>>, %arg8: memref<16x128xf32, #tpu.memory_space<vmem>>) attributes {dimension_semantics = [#tpu.dimension_semantics<parallel>, #tpu.dimension_semantics<parallel>], iteration_bounds = array<i64: 1, 3>, scalar_prefetch = 0 : i64, scratch_operands = 1 : i64, tpu.core_type = #tpu.core_type<tc>, window_params = [{transform_indices = @transform_0, window_bounds = array<i64: 2, 16, 128>}, {transform_indices = @transform_1, window_bounds = array<i64: 2, 1, 16, 6>}, {pipeline_mode = #tpu.pipeline_mode<synchronous>, transform_indices = @transform_2, window_bounds = array<i64: 16, 7>}, {pipeline_mode = #tpu.pipeline_mode<synchronous>, transform_indices = @transform_3, window_bounds = array<i64: 32, 16>}, {pipeline_mode = #tpu.pipeline_mode<synchronous>, transform_indices = @transform_4, window_bounds = array<i64: 32, 1>}, {transform_indices = @transform_5, window_bounds = array<i64: 2, 16, 128>}]} {
    %0 = tpu.iota {dimensions = array<i32: 1>} : vector<16x128xi32>
    %c3_i32 = arith.constant 3 : i32
    %1 = vector.broadcast %c3_i32 : i32 to vector<16x128xi32>
    %2 = arith.cmpi slt, %0, %1 : vector<16x128xi32>
    %c2_i32 = arith.constant 2 : i32
    %3 = vector.broadcast %c2_i32 : i32 to vector<16x128xi32>
    %4 = arith.cmpi slt, %0, %3 : vector<16x128xi32>
    %c1_i32 = arith.constant 1 : i32
    %5 = vector.broadcast %c1_i32 : i32 to vector<16x128xi32>
    %6 = arith.cmpi slt, %0, %5 : vector<16x128xi32>
    %c127_i32 = arith.constant 127 : i32
    %7 = vector.broadcast %c127_i32 : i32 to vector<16x128xi32>
    %8 = arith.cmpi sge, %0, %7 : vector<16x128xi32>
    %c126_i32 = arith.constant 126 : i32
    %9 = vector.broadcast %c126_i32 : i32 to vector<16x128xi32>
    %10 = arith.cmpi sge, %0, %9 : vector<16x128xi32>
    %c125_i32 = arith.constant 125 : i32
    %11 = vector.broadcast %c125_i32 : i32 to vector<16x128xi32>
    %12 = arith.cmpi sge, %0, %11 : vector<16x128xi32>
    %c0 = arith.constant 0 : index
    %c0_0 = arith.constant 0 : index
    %c0_1 = arith.constant 0 : index
    %13 = vector.load %arg2[%c0, %c0_0, %c0_1] : memref<2x16x128xf32, #tpu.memory_space<vmem>>, vector<1x16x128xf32>
    %14 = vector.shape_cast %13 : vector<1x16x128xf32> to vector<16x128xf32>
    %c0_2 = arith.constant 0 : index
    %c0_3 = arith.constant 0 : index
    %c0_4 = arith.constant 0 : index
    %c0_5 = arith.constant 0 : index
    %15 = vector.load %arg3[%c0_2, %c0_3, %c0_4, %c0_5] : memref<2x1x16x6xf32, #tpu.memory_space<vmem>>, vector<1x1x16x6xf32>
    %16 = vector.shape_cast %15 : vector<1x1x16x6xf32> to vector<16x6xf32>
    %c0_6 = arith.constant 0 : index
    %c0_7 = arith.constant 0 : index
    %17 = vector.load %arg8[%c0_6, %c0_7] : memref<16x128xf32, #tpu.memory_space<vmem>>, vector<16x6xf32>
    tpu.vector_store %arg8[%c0_6, %c0_7], %16 {strides = array<i32>} : memref<16x128xf32, #tpu.memory_space<vmem>>, vector<16x6xf32>,
    %c0_8 = arith.constant 0 : index
    %c0_9 = arith.constant 0 : index
    %18 = vector.load %arg8[%c0_8, %c0_9] : memref<16x128xf32, #tpu.memory_space<vmem>>, vector<16x128xf32>
    %c0_10 = arith.constant 0 : index
    %c3 = arith.constant 3 : index
    %19 = vector.load %arg4[%c0_10, %c3] : memref<16x7xf32, #tpu.memory_space<vmem>>, vector<16x1xf32>
    %20 = vector.broadcast %19 : vector<16x1xf32> to vector<16x128xf32>
    %21 = arith.mulf %14, %20 : vector<16x128xf32>
    %c3_i32_11 = arith.constant 3 : i32
    %22 = tpu.dynamic_rotate %14 by %c3_i32_11 dim 1 : vector<16x128xf32>, i32 -> vector<16x128xf32>
    %c0_i32 = arith.constant 0 : i32
    %23 = tpu.dynamic_rotate %18 by %c0_i32 dim 1 : vector<16x128xf32>, i32 -> vector<16x128xf32>
    %24 = arith.select %2, %23, %22 : vector<16x128xi1>, vector<16x128xf32>
    %c0_12 = arith.constant 0 : index
    %c0_13 = arith.constant 0 : index
    %25 = vector.load %arg4[%c0_12, %c0_13] : memref<16x7xf32, #tpu.memory_space<vmem>>, vector<16x1xf32>
    %26 = vector.broadcast %25 : vector<16x1xf32> to vector<16x128xf32>
    %27 = arith.mulf %24, %26 : vector<16x128xf32>
    %28 = arith.addf %21, %27 : vector<16x128xf32>
    %c2_i32_14 = arith.constant 2 : i32
    %29 = tpu.dynamic_rotate %14 by %c2_i32_14 dim 1 : vector<16x128xf32>, i32 -> vector<16x128xf32>
    %c127_i32_15 = arith.constant 127 : i32
    %30 = tpu.dynamic_rotate %18 by %c127_i32_15 dim 1 : vector<16x128xf32>, i32 -> vector<16x128xf32>
    %31 = arith.select %4, %30, %29 : vector<16x128xi1>, vector<16x128xf32>
    %c0_16 = arith.constant 0 : index
    %c1 = arith.constant 1 : index
    %32 = vector.load %arg4[%c0_16, %c1] : memref<16x7xf32, #tpu.memory_space<vmem>>, vector<16x1xf32>
    %33 = vector.broadcast %32 : vector<16x1xf32> to vector<16x128xf32>
    %34 = arith.mulf %31, %33 : vector<16x128xf32>
    %35 = arith.addf %28, %34 : vector<16x128xf32>
    %c1_i32_17 = arith.constant 1 : i32
    %36 = tpu.dynamic_rotate %14 by %c1_i32_17 dim 1 : vector<16x128xf32>, i32 -> vector<16x128xf32>
    %c126_i32_18 = arith.constant 126 : i32
    %37 = tpu.dynamic_rotate %18 by %c126_i32_18 dim 1 : vector<16x128xf32>, i32 -> vector<16x128xf32>
    %38 = arith.select %6, %37, %36 : vector<16x128xi1>, vector<16x128xf32>
    %c0_19 = arith.constant 0 : index
    %c2 = arith.constant 2 : index
    %39 = vector.load %arg4[%c0_19, %c2] : memref<16x7xf32, #tpu.memory_space<vmem>>, vector<16x1xf32>
    %40 = vector.broadcast %39 : vector<16x1xf32> to vector<16x128xf32>
    %41 = arith.mulf %38, %40 : vector<16x128xf32>
    %42 = arith.addf %35, %41 : vector<16x128xf32>
    %c127_i32_20 = arith.constant 127 : i32
    %43 = tpu.dynamic_rotate %14 by %c127_i32_20 dim 1 : vector<16x128xf32>, i32 -> vector<16x128xf32>
    %c124_i32 = arith.constant 124 : i32
    %44 = tpu.dynamic_rotate %18 by %c124_i32 dim 1 : vector<16x128xf32>, i32 -> vector<16x128xf32>
    %45 = arith.select %8, %44, %43 : vector<16x128xi1>, vector<16x128xf32>
    %c0_21 = arith.constant 0 : index
    %c4 = arith.constant 4 : index
    %46 = vector.load %arg4[%c0_21, %c4] : memref<16x7xf32, #tpu.memory_space<vmem>>, vector<16x1xf32>
    %47 = vector.broadcast %46 : vector<16x1xf32> to vector<16x128xf32>
    %48 = arith.mulf %45, %47 : vector<16x128xf32>
    %49 = arith.addf %42, %48 : vector<16x128xf32>
    %c126_i32_22 = arith.constant 126 : i32
    %50 = tpu.dynamic_rotate %14 by %c126_i32_22 dim 1 : vector<16x128xf32>, i32 -> vector<16x128xf32>
    %c123_i32 = arith.constant 123 : i32
    %51 = tpu.dynamic_rotate %18 by %c123_i32 dim 1 : vector<16x128xf32>, i32 -> vector<16x128xf32>
    %52 = arith.select %10, %51, %50 : vector<16x128xi1>, vector<16x128xf32>
    %c0_23 = arith.constant 0 : index
    %c5 = arith.constant 5 : index
    %53 = vector.load %arg4[%c0_23, %c5] : memref<16x7xf32, #tpu.memory_space<vmem>>, vector<16x1xf32>
    %54 = vector.broadcast %53 : vector<16x1xf32> to vector<16x128xf32>
    %55 = arith.mulf %52, %54 : vector<16x128xf32>
    %56 = arith.addf %49, %55 : vector<16x128xf32>
    %c125_i32_24 = arith.constant 125 : i32
    %57 = tpu.dynamic_rotate %14 by %c125_i32_24 dim 1 : vector<16x128xf32>, i32 -> vector<16x128xf32>
    %c122_i32 = arith.constant 122 : i32
    %58 = tpu.dynamic_rotate %18 by %c122_i32 dim 1 : vector<16x128xf32>, i32 -> vector<16x128xf32>
    %59 = arith.select %12, %58, %57 : vector<16x128xi1>, vector<16x128xf32>
    %c0_25 = arith.constant 0 : index
    %c6 = arith.constant 6 : index
    %60 = vector.load %arg4[%c0_25, %c6] : memref<16x7xf32, #tpu.memory_space<vmem>>, vector<16x1xf32>
    %61 = vector.broadcast %60 : vector<16x1xf32> to vector<16x128xf32>
    %62 = arith.mulf %59, %61 : vector<16x128xf32>
    %63 = arith.addf %56, %62 : vector<16x128xf32>
    %c0_26 = arith.constant 0 : index
    %c0_27 = arith.constant 0 : index
    %64 = vector.load %arg5[%c0_26, %c0_27] : memref<32x16xf32, #tpu.memory_space<vmem>>, vector<32x16xf32>
    %cst = arith.constant dense<0.000000e+00> : vector<32x128xf32>
    %65 = tpu.matmul %64, %63, %cst {dimension_numbers = #tpu.dot_dimension_numbers<[1], [0], [0], [1], [0, 0, 1, 1], [], []>} : vector<32x16xf32>, vector<16x128xf32>, vector<32x128xf32> -> vector<32x128xf32>
    %c0_28 = arith.constant 0 : index
    %c0_29 = arith.constant 0 : index
    %66 = vector.load %arg6[%c0_28, %c0_29] : memref<32x1xf32, #tpu.memory_space<vmem>>, vector<32x1xf32>
    %67 = vector.broadcast %66 : vector<32x1xf32> to vector<32x128xf32>
    %68 = arith.addf %65, %67 : vector<32x128xf32>
    %69 = vector.extract_strided_slice %68 {offsets = [0, 0], sizes = [16, 128], strides = [1, 1]} : vector<32x128xf32> to vector<16x128xf32>
    %70 = vector.extract_strided_slice %68 {offsets = [16, 0], sizes = [16, 128], strides = [1, 1]} : vector<32x128xf32> to vector<16x128xf32>
    %cst_30 = arith.constant 0.000000e+00 : f32
    %71 = vector.broadcast %cst_30 : f32 to vector<16x128xf32>
    %72 = arith.subf %71, %70 : vector<16x128xf32>
    %73 = math.exp %72 : vector<16x128xf32>
    %cst_31 = arith.constant 1.000000e+00 : f32
    %74 = vector.broadcast %cst_31 : f32 to vector<16x128xf32>
    %75 = arith.addf %74, %73 : vector<16x128xf32>
    %76 = tpu.reciprocal %75 : vector<16x128xf32> -> vector<16x128xf32>
    %77 = arith.mulf %69, %76 : vector<16x128xf32>
    %78 = arith.addf %14, %77 : vector<16x128xf32>
    %c0_32 = arith.constant 0 : index
    %c0_33 = arith.constant 0 : index
    %c0_34 = arith.constant 0 : index
    %79 = vector.load %arg7[%c0_32, %c0_33, %c0_34] : memref<2x16x128xf32, #tpu.memory_space<vmem>>, vector<1x16x128xf32>
    %80 = vector.shape_cast %79 : vector<1x16x128xf32> to vector<16x128xf32>
    %81 = vector.shape_cast %78 : vector<16x128xf32> to vector<1x16x128xf32>
    tpu.vector_store %arg7[%c0_32, %c0_33, %c0_34], %81 {strides = array<i32>} : memref<2x16x128xf32, #tpu.memory_space<vmem>>, vector<1x16x128xf32>,
    %c1_35 = arith.constant 1 : index
    %c0_36 = arith.constant 0 : index
    %c0_37 = arith.constant 0 : index
    %82 = vector.load %arg2[%c1_35, %c0_36, %c0_37] : memref<2x16x128xf32, #tpu.memory_space<vmem>>, vector<1x16x128xf32>
    %83 = vector.shape_cast %82 : vector<1x16x128xf32> to vector<16x128xf32>
    %c1_38 = arith.constant 1 : index
    %c0_39 = arith.constant 0 : index
    %c0_40 = arith.constant 0 : index
    %c0_41 = arith.constant 0 : index
    %84 = vector.load %arg3[%c1_38, %c0_39, %c0_40, %c0_41] : memref<2x1x16x6xf32, #tpu.memory_space<vmem>>, vector<1x1x16x6xf32>
    %85 = vector.shape_cast %84 : vector<1x1x16x6xf32> to vector<16x6xf32>
    %c0_42 = arith.constant 0 : index
    %c0_43 = arith.constant 0 : index
    %86 = vector.load %arg8[%c0_42, %c0_43] : memref<16x128xf32, #tpu.memory_space<vmem>>, vector<16x6xf32>
    tpu.vector_store %arg8[%c0_42, %c0_43], %85 {strides = array<i32>} : memref<16x128xf32, #tpu.memory_space<vmem>>, vector<16x6xf32>,
    %c0_44 = arith.constant 0 : index
    %c0_45 = arith.constant 0 : index
    %87 = vector.load %arg8[%c0_44, %c0_45] : memref<16x128xf32, #tpu.memory_space<vmem>>, vector<16x128xf32>
    %c0_46 = arith.constant 0 : index
    %c3_47 = arith.constant 3 : index
    %88 = vector.load %arg4[%c0_46, %c3_47] : memref<16x7xf32, #tpu.memory_space<vmem>>, vector<16x1xf32>
    %89 = vector.broadcast %88 : vector<16x1xf32> to vector<16x128xf32>
    %90 = arith.mulf %83, %89 : vector<16x128xf32>
    %c3_i32_48 = arith.constant 3 : i32
    %91 = tpu.dynamic_rotate %83 by %c3_i32_48 dim 1 : vector<16x128xf32>, i32 -> vector<16x128xf32>
    %c0_i32_49 = arith.constant 0 : i32
    %92 = tpu.dynamic_rotate %87 by %c0_i32_49 dim 1 : vector<16x128xf32>, i32 -> vector<16x128xf32>
    %93 = arith.select %2, %92, %91 : vector<16x128xi1>, vector<16x128xf32>
    %c0_50 = arith.constant 0 : index
    %c0_51 = arith.constant 0 : index
    %94 = vector.load %arg4[%c0_50, %c0_51] : memref<16x7xf32, #tpu.memory_space<vmem>>, vector<16x1xf32>
    %95 = vector.broadcast %94 : vector<16x1xf32> to vector<16x128xf32>
    %96 = arith.mulf %93, %95 : vector<16x128xf32>
    %97 = arith.addf %90, %96 : vector<16x128xf32>
    %c2_i32_52 = arith.constant 2 : i32
    %98 = tpu.dynamic_rotate %83 by %c2_i32_52 dim 1 : vector<16x128xf32>, i32 -> vector<16x128xf32>
    %c127_i32_53 = arith.constant 127 : i32
    %99 = tpu.dynamic_rotate %87 by %c127_i32_53 dim 1 : vector<16x128xf32>, i32 -> vector<16x128xf32>
    %100 = arith.select %4, %99, %98 : vector<16x128xi1>, vector<16x128xf32>
    %c0_54 = arith.constant 0 : index
    %c1_55 = arith.constant 1 : index
    %101 = vector.load %arg4[%c0_54, %c1_55] : memref<16x7xf32, #tpu.memory_space<vmem>>, vector<16x1xf32>
    %102 = vector.broadcast %101 : vector<16x1xf32> to vector<16x128xf32>
    %103 = arith.mulf %100, %102 : vector<16x128xf32>
    %104 = arith.addf %97, %103 : vector<16x128xf32>
    %c1_i32_56 = arith.constant 1 : i32
    %105 = tpu.dynamic_rotate %83 by %c1_i32_56 dim 1 : vector<16x128xf32>, i32 -> vector<16x128xf32>
    %c126_i32_57 = arith.constant 126 : i32
    %106 = tpu.dynamic_rotate %87 by %c126_i32_57 dim 1 : vector<16x128xf32>, i32 -> vector<16x128xf32>
    %107 = arith.select %6, %106, %105 : vector<16x128xi1>, vector<16x128xf32>
    %c0_58 = arith.constant 0 : index
    %c2_59 = arith.constant 2 : index
    %108 = vector.load %arg4[%c0_58, %c2_59] : memref<16x7xf32, #tpu.memory_space<vmem>>, vector<16x1xf32>
    %109 = vector.broadcast %108 : vector<16x1xf32> to vector<16x128xf32>
    %110 = arith.mulf %107, %109 : vector<16x128xf32>
    %111 = arith.addf %104, %110 : vector<16x128xf32>
    %c127_i32_60 = arith.constant 127 : i32
    %112 = tpu.dynamic_rotate %83 by %c127_i32_60 dim 1 : vector<16x128xf32>, i32 -> vector<16x128xf32>
    %c124_i32_61 = arith.constant 124 : i32
    %113 = tpu.dynamic_rotate %87 by %c124_i32_61 dim 1 : vector<16x128xf32>, i32 -> vector<16x128xf32>
    %114 = arith.select %8, %113, %112 : vector<16x128xi1>, vector<16x128xf32>
    %c0_62 = arith.constant 0 : index
    %c4_63 = arith.constant 4 : index
    %115 = vector.load %arg4[%c0_62, %c4_63] : memref<16x7xf32, #tpu.memory_space<vmem>>, vector<16x1xf32>
    %116 = vector.broadcast %115 : vector<16x1xf32> to vector<16x128xf32>
    %117 = arith.mulf %114, %116 : vector<16x128xf32>
    %118 = arith.addf %111, %117 : vector<16x128xf32>
    %c126_i32_64 = arith.constant 126 : i32
    %119 = tpu.dynamic_rotate %83 by %c126_i32_64 dim 1 : vector<16x128xf32>, i32 -> vector<16x128xf32>
    %c123_i32_65 = arith.constant 123 : i32
    %120 = tpu.dynamic_rotate %87 by %c123_i32_65 dim 1 : vector<16x128xf32>, i32 -> vector<16x128xf32>
    %121 = arith.select %10, %120, %119 : vector<16x128xi1>, vector<16x128xf32>
    %c0_66 = arith.constant 0 : index
    %c5_67 = arith.constant 5 : index
    %122 = vector.load %arg4[%c0_66, %c5_67] : memref<16x7xf32, #tpu.memory_space<vmem>>, vector<16x1xf32>
    %123 = vector.broadcast %122 : vector<16x1xf32> to vector<16x128xf32>
    %124 = arith.mulf %121, %123 : vector<16x128xf32>
    %125 = arith.addf %118, %124 : vector<16x128xf32>
    %c125_i32_68 = arith.constant 125 : i32
    %126 = tpu.dynamic_rotate %83 by %c125_i32_68 dim 1 : vector<16x128xf32>, i32 -> vector<16x128xf32>
    %c122_i32_69 = arith.constant 122 : i32
    %127 = tpu.dynamic_rotate %87 by %c122_i32_69 dim 1 : vector<16x128xf32>, i32 -> vector<16x128xf32>
    %128 = arith.select %12, %127, %126 : vector<16x128xi1>, vector<16x128xf32>
    %c0_70 = arith.constant 0 : index
    %c6_71 = arith.constant 6 : index
    %129 = vector.load %arg4[%c0_70, %c6_71] : memref<16x7xf32, #tpu.memory_space<vmem>>, vector<16x1xf32>
    %130 = vector.broadcast %129 : vector<16x1xf32> to vector<16x128xf32>
    %131 = arith.mulf %128, %130 : vector<16x128xf32>
    %132 = arith.addf %125, %131 : vector<16x128xf32>
    %c0_72 = arith.constant 0 : index
    %c0_73 = arith.constant 0 : index
    %133 = vector.load %arg5[%c0_72, %c0_73] : memref<32x16xf32, #tpu.memory_space<vmem>>, vector<32x16xf32>
    %cst_74 = arith.constant dense<0.000000e+00> : vector<32x128xf32>
    %134 = tpu.matmul %133, %132, %cst_74 {dimension_numbers = #tpu.dot_dimension_numbers<[1], [0], [0], [1], [0, 0, 1, 1], [], []>} : vector<32x16xf32>, vector<16x128xf32>, vector<32x128xf32> -> vector<32x128xf32>
    %c0_75 = arith.constant 0 : index
    %c0_76 = arith.constant 0 : index
    %135 = vector.load %arg6[%c0_75, %c0_76] : memref<32x1xf32, #tpu.memory_space<vmem>>, vector<32x1xf32>
    %136 = vector.broadcast %135 : vector<32x1xf32> to vector<32x128xf32>
    %137 = arith.addf %134, %136 : vector<32x128xf32>
    %138 = vector.extract_strided_slice %137 {offsets = [0, 0], sizes = [16, 128], strides = [1, 1]} : vector<32x128xf32> to vector<16x128xf32>
    %139 = vector.extract_strided_slice %137 {offsets = [16, 0], sizes = [16, 128], strides = [1, 1]} : vector<32x128xf32> to vector<16x128xf32>
    %cst_77 = arith.constant 0.000000e+00 : f32
    %140 = vector.broadcast %cst_77 : f32 to vector<16x128xf32>
    %141 = arith.subf %140, %139 : vector<16x128xf32>
    %142 = math.exp %141 : vector<16x128xf32>
    %cst_78 = arith.constant 1.000000e+00 : f32
    %143 = vector.broadcast %cst_78 : f32 to vector<16x128xf32>
    %144 = arith.addf %143, %142 : vector<16x128xf32>
    %145 = tpu.reciprocal %144 : vector<16x128xf32> -> vector<16x128xf32>
    %146 = arith.mulf %138, %145 : vector<16x128xf32>
    %147 = arith.addf %83, %146 : vector<16x128xf32>
    %c1_79 = arith.constant 1 : index
    %c0_80 = arith.constant 0 : index
    %c0_81 = arith.constant 0 : index
    %148 = vector.load %arg7[%c1_79, %c0_80, %c0_81] : memref<2x16x128xf32, #tpu.memory_space<vmem>>, vector<1x16x128xf32>
    %149 = vector.shape_cast %148 : vector<1x16x128xf32> to vector<16x128xf32>
    %150 = vector.shape_cast %147 : vector<16x128xf32> to vector<1x16x128xf32>
    tpu.vector_store %arg7[%c1_79, %c0_80, %c0_81], %150 {strides = array<i32>} : memref<2x16x128xf32, #tpu.memory_space<vmem>>, vector<1x16x128xf32>,
    return
  }
  func.func @transform_0(%arg0: i32, %arg1: i32) -> (i32, i32, i32) {
    %c0_i32 = arith.constant 0 : i32
    %c0_i32_0 = arith.constant 0 : i32
    return %arg0, %c0_i32, %arg1 : i32, i32, i32
  }
  func.func @transform_1(%arg0: i32, %arg1: i32) -> (i32, i32, i32, i32) {
    %c0_i32 = arith.constant 0 : i32
    %c0_i32_0 = arith.constant 0 : i32
    %c0_i32_1 = arith.constant 0 : i32
    return %arg0, %arg1, %c0_i32, %c0_i32_0 : i32, i32, i32, i32
  }
  func.func @transform_2(%arg0: i32, %arg1: i32) -> (i32, i32) {
    %c0_i32 = arith.constant 0 : i32
    %c0_i32_0 = arith.constant 0 : i32
    %c0_i32_1 = arith.constant 0 : i32
    return %c0_i32, %c0_i32_0 : i32, i32
  }
  func.func @transform_3(%arg0: i32, %arg1: i32) -> (i32, i32) {
    %c0_i32 = arith.constant 0 : i32
    %c0_i32_0 = arith.constant 0 : i32
    %c0_i32_1 = arith.constant 0 : i32
    return %c0_i32, %c0_i32_0 : i32, i32
  }
  func.func @transform_4(%arg0: i32, %arg1: i32) -> (i32, i32) {
    %c0_i32 = arith.constant 0 : i32
    %c0_i32_0 = arith.constant 0 : i32
    %c0_i32_1 = arith.constant 0 : i32
    return %c0_i32, %c0_i32_0 : i32, i32
  }
  func.func @transform_5(%arg0: i32, %arg1: i32) -> (i32, i32, i32) {
    %c0_i32 = arith.constant 0 : i32
    %c0_i32_0 = arith.constant 0 : i32
    return %arg0, %c0_i32, %arg1 : i32, i32, i32
  }
}

</mosaic_0001>

<bundles_post_ra>
// kernel: tpu_custom_call.1
= control target key start
LH: loop header
LB: loop body
LE: loop exit
PB: predicated region body
PF: predicated region fallthrough
CT: control target
= control target key end

     0   :  { %10 = vsyncpa [#allocation6], 0  ;;  %s1802_s0 = inlined_call_operand.vmem [shape: f32[2,16,384], index: 0, kind: input, shape index: {}]   ;;  %s1803_s1 = inlined_call_operand.vmem [shape: f32[2,3,16,6], index: 1, kind: input, shape index: {}]   ;;  %s1804_s2 = inlined_call_operand.vmem [shape: f32[16,7], index: 2, kind: input, shape index: {}]   ;;  %s1805_s3 = inlined_call_operand.vmem [shape: f32[32,16], index: 3, kind: input, shape index: {}]   ;;  %s1806_s4 = inlined_call_operand.vmem [shape: f32[32,1], index: 4, kind: input, shape index: {}]   ;;  %s1807_s5 = inlined_call_operand.hbm [shape: f32[2,16,384], index: 5, kind: output, shape index: {}]  }
   0x1   :  { %12 = vsyncpa [#allocation6 + $0x1], 0  ;;  %s1383_s18 = smov 0   ;;  %s1385_s19 = smov 0  }
   0x2   :  { %s1387_s20 = smov 0   ;;  %s1389_s21 = smov 0  }
   0x3   :  { %s1391_s22 = smov 0   ;;  %s1393_s23 = smov 0  }
   0x4 LB: > { %s1075_s24 = sadd.s32 4294967295, %s1331_s23   ;;  %s1076_s25 = sadd.s32 4294967294, %s1331_s23   ;;  %s1331_s23 = sphi %s1393_s23, %s18_s23   ;;  %s1327_s22 = sphi %s1391_s22, %s1815_s22   ;;  %s1323_s21 = sphi %s1389_s21, %s1814_s21   ;;  %s1319_s20 = sphi %s1387_s20, %s1813_s20   ;;  %s1315_s19 = sphi %s1385_s19, %s1812_s19   ;;  %s1311_s18 = sphi %s1383_s18, %s1811_s18  }
   0x5   : > { %s27_s26 = sadd.s32 1, %s1327_s22  ;;  %s39_s27 = sadd.s32 1, %s1319_s20 }
   0x6   : > { %p28_p0 = scmp.ge.s32.totalorder %s27_s26, 3  ;;  %p46_p1 = scmp.ne.s32.totalorder %s1319_s20, %s1315_s19 }
   0x7   : > { %p47_p2 = scmp.eq.s32.totalorder %s1331_s23, 0  ;;  %p169_p3 = scmp.eq.s32.totalorder %s1075_s24, 2 }
   0x8   : > { %s1817_s26 = smov (%p28_p0, %s27_s26), 0  ;;  %p174_p6 = scmp.ne.s32.totalorder %s1315_s19, %s1311_s18 }
   0x9   : > { %p1422_p4 = por %p47_p2, %p46_p1  ;;  %p1426_p5 = por %p169_p3, %p46_p1 }
   0xa   : > { %s35_s30 = ssub.s32 %s1327_s22, %s1817_s26  ;;  %p175_p8 = scmp.eq.s32.totalorder %s1076_s25, 2 }
   0xb   : > { %p37_p7 = scmp.eq.s32.totalorder %s35_s30, 0  ;;  %p1078_p10 = scmp.ge.s32.totalorder %s1331_s23, 3 }
   0xc   : > { %p1437_p9 = por %p175_p8, %p174_p6 }
   0xd   : > { %s1435_s6 = scalar_select %p37_p7, %s1319_s20, %s39_s27  }
   0xe   : > { %200 = sbr.rel (%p1078_p10) target bundleno = 35 (0x23), region = 28 }
  0x15   : > { %203 = sbr.rel (!%p1422_p4) target bundleno = 28 (0x1c), region = 32  ;;  %s205_s8 = sand.u32 (%p1422_p4), 1, %s1319_s20  }
  0x16   : > { %s1080_s9 = sshll.u32 (%p1422_p4), %s1327_s22, 3  ;;  %s1079_s10 = sshll.u32 (%p1422_p4), %s205_s8, 5 }
  0x17   : > { %s212_s13 = scalar_lea.vmem (%p1422_p4), %s1802_s0, %s1080_s9  ;;  %s207_s14 = scalar_lea.vmem (%p1422_p4), [#allocation3], %s1079_s10 }
  0x18   : > { %v246_v0 = vld [vmem:[%s212_s13] sm:$0xff] (%p1422_p4)  ;;  %v248_v1 = vld [vmem:[%s212_s13 + $0x18] sm:$0xff] (%p1422_p4)  ;;  %v250_v2 = vld [vmem:[%s212_s13 + $0x30] sm:$0xff] (%p1422_p4) }
  0x19   : > { %247 = vst [vmem:[%s207_s14] sm:$0xff] (%p1422_p4), %v246_v0  ;;  %249 = vst [vmem:[%s207_s14 + $0x8] sm:$0xff] (%p1422_p4), %v248_v1  ;;  %v252_v3 = vld [vmem:[%s212_s13 + $0x48] sm:$0xff] (%p1422_p4) }
  0x1a   : > { %251 = vst [vmem:[%s207_s14 + $0x10] sm:$0xff] (%p1422_p4), %v250_v2  ;;  %253 = vst [vmem:[%s207_s14 + $0x18] sm:$0xff] (%p1422_p4), %v252_v3 }
  0x1c PF: > { %259 = sbr.rel (!%p1422_p4) target bundleno = 35 (0x23), region = 70  ;;  %s261_s15 = sand.u32 (%p1422_p4), 1, %s1319_s20  }
  0x1d   : > { %s1106_s16 = sshll.u32 (%p1422_p4), %s1327_s22, 4  ;;  %s1081_s17 = sshll.u32 (%p1422_p4), %s261_s15, 5 }
  0x1e   : > { %s269_s27 = scalar_lea.vmem (%p1422_p4), %s1803_s1, %s1106_s16  ;;  %s263_s30 = scalar_lea.vmem (%p1422_p4), [#allocation4], %s1081_s17 }
  0x1f   : > { %v303_v4 = vld [vmem:[%s269_s27] sm:$0xff] (%p1422_p4)  ;;  %v305_v5 = vld [vmem:[%s269_s27 + $0x8] sm:$0xff] (%p1422_p4)  ;;  %v307_v6 = vld [vmem:[%s269_s27 + $0x30] sm:$0xff] (%p1422_p4) }
  0x20   : > { %304 = vst [vmem:[%s263_s30] sm:$0xff] (%p1422_p4), %v303_v4  ;;  %306 = vst [vmem:[%s263_s30 + $0x8] sm:$0xff] (%p1422_p4), %v305_v5  ;;  %v309_v7 = vld [vmem:[%s269_s27 + $0x38] sm:$0xff] (%p1422_p4) }
  0x21   : > { %308 = vst [vmem:[%s263_s30 + $0x10] sm:$0xff] (%p1422_p4), %v307_v6  ;;  %310 = vst [vmem:[%s263_s30 + $0x18] sm:$0xff] (%p1422_p4), %v309_v7 }
  0x23 PF: > { %p1084_p11 = scmp.ge.s32.totalorder %s1331_s23, 1  ;;  %p315_p12 = scmp.lt.s32.totalorder %s1331_s23, 4 }
  0x25   : > { %p316_p13 = pnand %p1084_p11, %p315_p12 }
  0x26   : > { %v1461_v8 = vld [vmem:[%s1804_s2] sm:$0xff] (!%p316_p13)  ;;  %v1333_v9 = vmov (!%p316_p13), 0   ;;  %v1334_v10 = vmov (!%p316_p13), 3   ;;  %s322_s9 = sand.u32 (!%p316_p13), 1, %s1315_s19   ;;  %vm375_vm0 = vcmask (!%p316_p13), 48128   ;;  %v1474_v11 = vld [vmem:[%s1804_s2 + $0x8] sm:$0xff] (!%p316_p13)  ;;  %v363_v40 = vlaneseq (!%p316_p13) }
  0x27   : > { %319 = sbr.rel (%p316_p13) target bundleno = 602 (0x25a), region = 108  ;;  %1222 = vset.pattern.permute.xlu1 (!%p316_p13), %v1333_v9  ;;  %1221 = vset.pattern.permute.xlu0 (!%p316_p13), %v1334_v10  ;;  %s1469_s10 = sshll.u32 (!%p316_p13), %s322_s9, 5  ;;  %v1335_v18 = vmov (!%p316_p13), 1   ;;  %v1336_v19 = vmov (!%p316_p13), 2   ;;  %v1338_v21 = vmov (!%p316_p13), 4   ;;  %v1340_v23 = vmov (!%p316_p13), 5  }
  0x28   : > { %401 = vperm.xlu1 (!%p316_p13), %1222, %v1461_v8   ;;  %384 = vperm.xlu0 (!%p316_p13), %1221, %v1461_v8   ;;  %s331_s13 = scalar_lea.vmem (!%p316_p13), [#allocation4], %s1469_s10  ;;  %s324_s14 = scalar_lea.vmem (!%p316_p13), [#allocation3], %s1469_s10  ;;  %v1343_v27 = vmov (!%p316_p13), 6   ;;  %v528_v33 = vld [vmem:[%s1806_s4 + $0x10] sm:$0xff] (!%p316_p13)  ;;  %v823_v36 = vld [vmem:[%s1806_s4 + $0x18] sm:$0xff] (!%p316_p13)  ;;  %v527_v38 = vld [vmem:[%s1806_s4 + $0x8] sm:$0xff] (!%p316_p13) }
  0x29   : > { %v373_v12 = vld [vmem:[%s331_s13] sm:$0xff] (!%p316_p13)  ;;  %v374_v13 = vld [vmem:[%s331_s13 + $0x8] sm:$0xff] (!%p316_p13)  ;;  %v1095_v14 = vld [vmem:[%s331_s13 + $0x18] sm:$0xff] (!%p316_p13)  ;;  %s1337_s15 = smov (!%p316_p13), 3   ;;  %s1339_s16 = smov (!%p316_p13), 2   ;;  %v1612_v43 = vand.u32 (!%p316_p13), 127, %v363_v40 }
  0x2a   : > { %376 = vst.msk [vmem:[#allocation2] sm:$0xff] (!%p316_p13), %vm375_vm0, %v373_v12  ;;  %377 = vst.msk [vmem:[#allocation2 + $0x8] sm:$0xff] (!%p316_p13), %vm375_vm0, %v374_v13  ;;  %v1094_v15 = vld [vmem:[%s331_s13 + $0x10] sm:$0xff] (!%p316_p13)  ;;  %v1497_v20 = vld [vmem:[%s324_s14 + $0x8] sm:$0xff] (!%p316_p13)  ;;  %s1341_s17 = smov (!%p316_p13), 127   ;;  %s1342_s24 = smov (!%p316_p13), 1  }
  0x2b   : > { %v1504_v22 = vld [vmem:[%s324_s14] sm:$0xff] (!%p316_p13)  ;;  %v1513_v24 = vld [vmem:[%s324_s14 + $0x10] sm:$0xff] (!%p316_p13)  ;;  %v1516_v25 = vld [vmem:[%s324_s14 + $0x18] sm:$0xff] (!%p316_p13)  ;;  %s1344_s25 = smov (!%p316_p13), 126   ;;  %s1345_s27 = smov (!%p316_p13), 124   ;;  %vm365_vm1 = vcmp.lt.s32.totalorder (!%p316_p13), %v1612_v43, 3 }
  0x2c   : > { %405 = vperm.xlu1 (!%p316_p13), %1222, %v1474_v11   ;;  %389 = vperm.xlu0 (!%p316_p13), %1221, %v1474_v11   ;;  %s1346_s30 = smov (!%p316_p13), 123   ;;  %s1347_s28 = smov (!%p316_p13), 125   ;;  %v522_v53 = vld [vmem:[%s1805_s3] sm:$0xff] (!%p316_p13)  ;;  %vm550_vm2 = vcmask (!%p316_p13), 130048   ;;  %vm366_vm3 = vcmp.lt.s32.totalorder (!%p316_p13), %v1612_v43, 2  ;;  %vm367_vm4 = vcmp.lt.s32.totalorder (!%p316_p13), %v1612_v43, 1 }
  0x2d   : > { %s1348_s8 = smov (!%p316_p13), 122   ;;  %1123 = vmatprep.mubr.msk.f32.mxu0 (!%p316_p13), %vm550_vm2, %v522_v53  ;;  %1133 = vmatprep.mubr.msk.f32.mxu1 (!%p316_p13), %vm550_vm2, %v522_v53  ;;  %v526_v3 = vld [vmem:[%s1806_s4] sm:$0xff] (!%p316_p13)  ;;  %vm368_vm5 = vcmp.ge.s32.totalorder (!%p316_p13), %v1612_v43, 127  ;;  %vm369_vm6 = vcmp.ge.s32.totalorder (!%p316_p13), %v1612_v43, 126  ;;  %vm370_vm7 = vcmp.ge.s32.totalorder (!%p316_p13), %v1612_v43, 125  ;;  %v525_v43 = vld [vmem:[%s1805_s3 + $0x18] sm:$0xff] (!%p316_p13) }
  0x2e   : > { %s359_s14 = scalar_lea.vmem [#allocation5], %s1469_s10 }
  0x30   : > { %1223 = vset.pattern.permute.xlu1 %v1334_v10  ;;  %678 = vperm.xlu0 %1221, %v1461_v8  }
  0x31   : > { %683 = vperm.xlu1 %1223, %v1474_v11   ;;  %v1483_v16 = vld [vmem:[#allocation2] sm:$0xff]  ;;  %v1485_v17 = vld [vmem:[#allocation2 + $0x8] sm:$0xff] }
  0x32   : > { %670 = vst.msk [vmem:[#allocation2] sm:$0xff] %vm375_vm0, %v1094_v15  ;;  %671 = vst.msk [vmem:[#allocation2 + $0x8] sm:$0xff] %vm375_vm0, %v1095_v14 }
  0x34   : > { %1226 = vset.pattern.permute.xlu0 %v1335_v18 }
  0x35   : > { %1224 = vset.pattern.permute.xlu1 %v1333_v9  ;;  %427 = vperm.xlu0 %1226, %v1474_v11  }
  0x36   : > { %699 = vperm.xlu1 %1224, %v1474_v11  }
  0x39   : > { %1227 = vset.pattern.permute.xlu0 %v1336_v19  ;;  %v1521_v26 = vld [vmem:[#allocation2 + $0x8] sm:$0xff]  ;;  %v1537_v28 = vld [vmem:[#allocation2] sm:$0xff] }
  0x3a   : > { %1225 = vset.pattern.permute.xlu1 %v1335_v18  ;;  %445 = vperm.xlu0 %1227, %v1461_v8  }
  0x3b   : > { %423 = vperm.xlu1 %1225, %v1461_v8  }
  0x3e   : > { %743 = vperm.xlu0 %1227, %v1474_v11  }
  0x3f   : > { %717 = vperm.xlu1 %1225, %v1461_v8  }
  0x42   : > { %396 = vrot.lane.b32.xlu0 %v1497_v20, %s1337_s15 }
  0x43   : > { %721 = vperm.xlu1 %1225, %v1474_v11   ;;  %1230 = vset.pattern.permute.xlu0 %v1338_v21 }
  0x46   : > { %471 = vperm.xlu0 %1230, %v1474_v11  }
  0x47   : > { %1228 = vset.pattern.permute.xlu1 %v1336_v19 }
  0x48   : > { %449 = vperm.xlu1 %1228, %v1474_v11  }
  0x4a   : > { %761 = vperm.xlu0 %1230, %v1461_v8  }
  0x4c   : > { %739 = vperm.xlu1 %1228, %v1461_v8  }
  0x4e   : > { %412 = vrot.lane.b32.xlu0 %v1504_v22, %s1339_s16 }
  0x4f   : > { %1231 = vset.pattern.permute.xlu0 %v1340_v23 }
  0x50   : > { %394 = vrot.lane.b32.xlu1 %v1504_v22, %s1337_s15 }
  0x51   : > { %1229 = vset.pattern.permute.xlu1 %v1338_v21 }
  0x52   : > { %416 = vrot.lane.b32.xlu0 %v1483_v16, %s1341_s17 }
  0x54   : > { %467 = vperm.xlu1 %1229, %v1461_v8  }
  0x56   : > { %489 = vperm.xlu0 %1231, %v1461_v8  }
  0x58   : > { %688 = vrot.lane.b32.xlu1 %v1513_v24, %s1337_s15 }
  0x5a   : > { %708 = vrot.lane.b32.xlu0 %v1516_v25, %s1339_s16 }
  0x5c   : > { %690 = vrot.lane.b32.xlu1 %v1516_v25, %s1337_s15  ;;  %s1103_s15 = sshll.u32 %s1323_s21, 7  ;;  %s1756_s21 = scalar_lea.sflag [#allocation6], %s322_s9 }
  0x5e   : > { %712 = vrot.lane.b32.xlu0 %v1521_v26, %s1341_s17 }
  0x60   : > { %765 = vperm.xlu1 %1229, %v1474_v11  }
  0x62   : > { %787 = vperm.xlu0 %1231, %v1474_v11  }
  0x64   : > { %414 = vrot.lane.b32.xlu1 %v1497_v20, %s1339_s16 }
  0x65   : > { %1232 = vset.pattern.permute.xlu1 %v1340_v23 }
  0x66   : > { %436 = vrot.lane.b32.xlu0 %v1497_v20, %s1342_s24 }
  0x67   : > { %1234 = vset.pattern.permute.xlu0 %v1343_v27 }
  0x68   : > { %418 = vrot.lane.b32.xlu1 %v1485_v17, %s1341_s17 }
  0x6a   : > { %440 = vrot.lane.b32.xlu0 %v1485_v17, %s1344_s25 }
  0x6c   : > { %493 = vperm.xlu1 %1232, %v1474_v11  }
  0x6e   : > { %515 = vperm.xlu0 %1234, %v1474_v11  }
  0x70   : > { %706 = vrot.lane.b32.xlu1 %v1513_v24, %s1339_s16  ;;  %s974_s16 = sshll.u32 %s359_s14, 4  ;;  %s1751_s16 = int_to_ptr.vmem [resolvable:$true] %s974_s16 }
  0x71   : > { %s1253_s10 = scalar_lea.vmem %s1751_s16, 512 }
  0x72   : > { %732 = vrot.lane.b32.xlu0 %v1537_v28, %s1344_s25  ;;  %p1254_p0 = scmp.ne.s32.totalorder %s1751_s16, %s1253_s10 }
  0x74   : > { %710 = vrot.lane.b32.xlu1 %v1537_v28, %s1341_s17  ;;  %p1255_p1 = pnand %p1254_p0, %p1426_p5 }
  0x76   : > { %805 = vperm.xlu0 %1234, %v1461_v8   ;;  %p1256_p2 = pneg %p1255_p1 }
  0x78   : > { %783 = vperm.xlu1 %1232, %v1461_v8  }
  0x7a   : > { %1235 = vset.pattern.permute.xlu0 %v1333_v9 }
  0x7b   : > { %695 = vperm.xlu0 %1235, %v1461_v8  }
  0x7c   : > { %434 = vrot.lane.b32.xlu1 %v1504_v22, %s1342_s24 }
  0x7d   : > { %1233 = vset.pattern.permute.xlu1 %v1343_v27 }
  0x7f   : > { %456 = vrot.lane.b32.xlu0 %v1504_v22, %s1341_s17 }
  0x80   : > { %438 = vrot.lane.b32.xlu1 %v1483_v16, %s1344_s25 }
  0x83   : > { %460 = vrot.lane.b32.xlu0 %v1483_v16, %s1345_s27 }
  0x84   : > { %511 = vperm.xlu1 %1233, %v1461_v8  }
  0x87   : > { %750 = vrot.lane.b32.xlu0 %v1513_v24, %s1341_s17 }
  0x88   : > { %728 = vrot.lane.b32.xlu1 %v1513_v24, %s1342_s24 }
  0x8b   : > { %754 = vrot.lane.b32.xlu0 %v1537_v28, %s1345_s27 }
  0x8c   : > { %730 = vrot.lane.b32.xlu1 %v1516_v25, %s1342_s24 }
  0x8f   : > { %478 = vrot.lane.b32.xlu0 %v1504_v22, %s1344_s25 }
  0x90   : > { %734 = vrot.lane.b32.xlu1 %v1521_v26, %s1344_s25 }
  0x93   : > { %482 = vrot.lane.b32.xlu0 %v1483_v16, %s1346_s30 }
  0x94   : > { %809 = vperm.xlu1 %1233, %v1474_v11  }
  0x97   : > { %772 = vrot.lane.b32.xlu0 %v1513_v24, %s1344_s25 }
  0x98   : > { %458 = vrot.lane.b32.xlu1 %v1497_v20, %s1341_s17 }
  0x99   : > { %1236 = vset.pattern.permute.xlu1 %v1333_v9 }
  0x9b   : > { %776 = vrot.lane.b32.xlu0 %v1537_v28, %s1346_s30 }
  0x9c   : > { %462 = vrot.lane.b32.xlu1 %v1485_v17, %s1345_s27 }
  0x9f   : > { %500 = vrot.lane.b32.xlu0 %v1504_v22, %s1347_s28 }
  0xa0   : > { %752 = vrot.lane.b32.xlu1 %v1516_v25, %s1341_s17 }
  0xa3   : > { %504 = vrot.lane.b32.xlu0 %v1483_v16, %s1348_s8 }
  0xa4   : > { %756 = vrot.lane.b32.xlu1 %v1521_v26, %s1345_s27  ;;  %s1349_s27 = smov [#allocation5]  }
  0xa7   : > { %v402_v29 = vpop.permute.xlu1 %401  ;;  %794 = vrot.lane.b32.xlu0 %v1513_v24, %s1347_s28  ;;  %v385_v30 = vpop.permute.xlu0 %384 }
  0xa8   : > { %480 = vrot.lane.b32.xlu1 %v1497_v20, %s1344_s25  ;;  %v392_v60 = vmul.f32 %v385_v30, %v1504_v22 }
  0xab   : > { %v406_v31 = vpop.permute.xlu1 %405  ;;  %798 = vrot.lane.b32.xlu0 %v1537_v28, %s1348_s8  ;;  %v390_v32 = vpop.permute.xlu0 %389 }
  0xac   : > { %484 = vrot.lane.b32.xlu1 %v1485_v17, %s1346_s30  ;;  %v393_v49 = vmul.f32 %v390_v32, %v1497_v20 }
  0xaf   : > { %542 = vperm.xlu0 %1235, %v528_v33   ;;  %v1594_v34 = vpop.permute.xlu0 %678 }
  0xb0   : > { %v684_v35 = vpop.permute.xlu1 %683  ;;  %774 = vrot.lane.b32.xlu1 %v1516_v25, %s1344_s25  ;;  %s1748_s25 = scalar_lea.hbm %s1807_s5, %s1103_s15 }
  0xb1   : > { %v687_v10 = vmul.f32 %v1516_v25, %v684_v35 }
  0xb3   : > { %841 = vperm.xlu0 %1235, %v823_v36  }
  0xb4   : > { %v1601_v37 = vpop.permute.xlu0 %427  ;;  %778 = vrot.lane.b32.xlu1 %v1521_v26, %s1346_s30  ;;  %s1257_s30 = sshll.u32 %s1349_s27, 4  ;;  %s1258_s30 = int_to_ptr.vmem [resolvable:$false] %s1257_s30 }
  0xb5   : > { %v700_v39 = vpop.permute.xlu1 %699  ;;  %p1260_p3 = scmp.lt.s32.totalorder %s1751_s16, %s1258_s30 }
  0xb7   : > { %537 = vperm.xlu0 %1235, %v527_v38  }
  0xb8   : > { %502 = vrot.lane.b32.xlu1 %v1497_v20, %s1347_s28 }
  0xb9   : > { %v1610_v41 = vpop.permute.xlu0 %445 }
  0xba   : > { %v424_v42 = vpop.permute.xlu1 %423 }
  0xbb   : > { %831 = vperm.xlu0 %1235, %v527_v38  }
  0xbc   : > { %506 = vrot.lane.b32.xlu1 %v1485_v17, %s1348_s8 }
  0xbd   : > { %v1616_v44 = vpop.permute.xlu0 %743 }
  0xbe   : > { %v1618_v45 = vpop.permute.xlu1 %717 }
  0xc0   : > { %796 = vrot.lane.b32.xlu1 %v1516_v25, %s1347_s28  ;;  %s1259_s28 = scalar_lea.vmem %s1258_s30, 1024 }
  0xc1   : > { %v397_v46 = vpop.permute.xlu0 %396  ;;  %p1261_p4 = scmp.lt.s32.totalorder %s1259_s28, %s1253_s10 }
  0xc2   : > { %v399_v47 = vsel %vm365_vm1, %v1485_v17, %v397_v46  ;;  %v722_v48 = vpop.permute.xlu1 %721 }
  0xc3   : > { %v409_v50 = vmul.f32 %v406_v31, %v399_v47  ;;  %p1262_p6 = por %p1261_p4, %p1260_p3 }
  0xc4   : > { %800 = vrot.lane.b32.xlu1 %v1521_v26, %s1348_s8 }
  0xc5   : > { %v411_v51 = vadd.f32 %v409_v50, %v393_v49  ;;  %v1629_v52 = vpop.permute.xlu0 %471  ;;  %v686_v50 = vmul.f32 %v1513_v24, %v1594_v34  ;;  %p1263_p7 = pnand %p1262_p6, %p1256_p2 }
  0xc7   : > { %v450_v54 = vpop.permute.xlu1 %449 }
  0xc8   : > { %547 = vperm.xlu1 %1236, %v823_v36  }
  0xc9   : > { %v1636_v55 = vpop.permute.xlu0 %761 }
  0xcb   : > { %v1638_v56 = vpop.permute.xlu1 %739 }
  0xcc   : > { %836 = vperm.xlu1 %1236, %v528_v33  }
  0xcd   : > { %v413_v57 = vpop.permute.xlu0 %412 }
  0xcf   : > { %v395_v58 = vpop.permute.xlu1 %394 }
  0xd0   : > { %v398_v59 = vsel %vm365_vm1, %v1483_v16, %v395_v58  ;;  %532 = vperm.xlu1 %1236, %v526_v3  }
  0xd1   : > { %v408_v61 = vmul.f32 %v402_v29, %v398_v59  ;;  %v417_v62 = vpop.permute.xlu0 %416 }
  0xd2   : > { %v420_v63 = vsel %vm366_vm3, %v417_v62, %v413_v57 }
  0xd3   : > { %v410_v0 = vadd.f32 %v408_v61, %v392_v60  ;;  %v430_v1 = vmul.f32 %v424_v42, %v420_v63  ;;  %v468_v2 = vpop.permute.xlu1 %467 }
  0xd4   : > { %826 = vperm.xlu1 %1236, %v526_v3  }
  0xd5   : > { %v432_v4 = vadd.f32 %v430_v1, %v410_v0  ;;  %v1650_v5 = vpop.permute.xlu0 %489 }
  0xd7   : > { %v689_v6 = vpop.permute.xlu1 %688 }
  0xd8   : > { %v692_v49 = vsel %vm365_vm1, %v1537_v28, %v689_v6 }
  0xd9   : > { %v709_v7 = vpop.permute.xlu0 %708 }
  0xdb   : > { %v691_v8 = vpop.permute.xlu1 %690 }
  0xdc   : > { %v693_v9 = vsel %vm365_vm1, %v1521_v26, %v691_v8 }
  0xdd   : > { %v703_v11 = vmul.f32 %v700_v39, %v693_v9  ;;  %v713_v12 = vpop.permute.xlu0 %712 }
  0xde   : > { %v715_v13 = vsel %vm366_vm3, %v713_v12, %v709_v7 }
  0xdf   : > { %v705_v14 = vadd.f32 %v703_v11, %v687_v10  ;;  %v725_v15 = vmul.f32 %v722_v48, %v715_v13  ;;  %v1658_v16 = vpop.permute.xlu1 %765 }
  0xe1   : > { %v1660_v17 = vadd.f32 %v725_v15, %v705_v14  ;;  %v1662_v18 = vpop.permute.xlu0 %787 }
  0xe3   : > { %v415_v19 = vpop.permute.xlu1 %414 }
  0xe5   : > { %v437_v21 = vpop.permute.xlu0 %436 }
  0xe7   : > { %v419_v23 = vpop.permute.xlu1 %418 }
  0xe8   : > { %v421_v26 = vsel %vm366_vm3, %v419_v23, %v415_v19 }
  0xe9   : > { %v431_v27 = vmul.f32 %v1601_v37, %v421_v26  ;;  %v441_v29 = vpop.permute.xlu0 %440 }
  0xea   : > { %v443_v30 = vsel %vm367_vm4, %v441_v29, %v437_v21 }
  0xeb   : > { %v433_v31 = vadd.f32 %v431_v27, %v411_v51  ;;  %v453_v32 = vmul.f32 %v450_v54, %v443_v30  ;;  %v494_v33 = vpop.permute.xlu1 %493 }
  0xed   : > { %v455_v35 = vadd.f32 %v453_v32, %v433_v31  ;;  %v1670_v36 = vpop.permute.xlu0 %515 }
  0xef   : > { %v707_v38 = vpop.permute.xlu1 %706 }
  0xf1   : > { %v733_v39 = vpop.permute.xlu0 %732 }
  0xf3   : > { %v711_v40 = vpop.permute.xlu1 %710 }
  0xf4   : > { %v714_v42 = vsel %vm366_vm3, %v711_v40, %v707_v38 }
  0xf5   : > { %v724_v46 = vmul.f32 %v1618_v45, %v714_v42  ;;  %v1675_v47 = vpop.permute.xlu0 %805 }
  0xf7   : > { %v784_v37 = vpop.permute.xlu1 %783 }
  0xfa   : > { %v696_v48 = vpop.permute.xlu0 %695 }
  0xfb   : > { %v702_v51 = vmul.f32 %v696_v48, %v692_v49  ;;  %v435_v53 = vpop.permute.xlu1 %434 }
  0xfd   : > { %v704_v54 = vadd.f32 %v702_v51, %v686_v50 }
  0xfe   : > { %v457_v57 = vpop.permute.xlu0 %456 }
  0xff   : > { %v726_v58 = vadd.f32 %v724_v46, %v704_v54  ;;  %v439_v59 = vpop.permute.xlu1 %438 }
 0x100   : > { %v442_v45 = vsel %vm367_vm4, %v439_v59, %v435_v53 }
 0x101   : > { %v452_v60 = vmul.f32 %v1610_v41, %v442_v45 }
 0x102   : > { %v461_v61 = vpop.permute.xlu0 %460 }
 0x103   : > { %v454_v62 = vadd.f32 %v452_v60, %v432_v4  ;;  %v464_v28 = vsel %vm368_vm5, %v461_v61, %v457_v57  ;;  %v512_v63 = vpop.permute.xlu1 %511 }
 0x104   : > { %v474_v34 = vmul.f32 %v468_v2, %v464_v28 }
 0x106   : > { %v476_v0 = vadd.f32 %v474_v34, %v454_v62  ;;  %v751_v1 = vpop.permute.xlu0 %750 }
 0x107   : > { %v729_v3 = vpop.permute.xlu1 %728 }
 0x108   : > { %v736_v6 = vsel %vm367_vm4, %v733_v39, %v729_v3 }
 0x109   : > { %v746_v7 = vmul.f32 %v1638_v56, %v736_v6 }
 0x10a   : > { %v755_v8 = vpop.permute.xlu0 %754 }
 0x10b   : > { %v748_v9 = vadd.f32 %v746_v7, %v726_v58  ;;  %v758_v41 = vsel %vm368_vm5, %v755_v8, %v751_v1  ;;  %v731_v10 = vpop.permute.xlu1 %730 }
 0x10c   : > { %v768_v4 = vmul.f32 %v1636_v55, %v758_v41 }
 0x10e   : > { %v770_v11 = vadd.f32 %v768_v4, %v748_v9  ;;  %v479_v12 = vpop.permute.xlu0 %478 }
 0x10f   : > { %v735_v13 = vpop.permute.xlu1 %734 }
 0x112   : > { %v483_v2 = vpop.permute.xlu0 %482 }
 0x113   : > { %v486_v14 = vsel %vm369_vm6, %v483_v2, %v479_v12  ;;  %v810_v15 = vpop.permute.xlu1 %809 }
 0x114   : > { %v496_v56 = vmul.f32 %v1650_v5, %v486_v14 }
 0x116   : > { %v498_v19 = vadd.f32 %v496_v56, %v476_v0  ;;  %v773_v21 = vpop.permute.xlu0 %772 }
 0x117   : > { %v459_v23 = vpop.permute.xlu1 %458 }
 0x11a   : > { %v777_v26 = vpop.permute.xlu0 %776 }
 0x11b   : > { %v780_v27 = vsel %vm369_vm6, %v777_v26, %v773_v21  ;;  %v463_v55 = vpop.permute.xlu1 %462 }
 0x11c   : > { %v790_v29 = vmul.f32 %v784_v37, %v780_v27  ;;  %v465_v38 = vsel %vm368_vm5, %v463_v55, %v459_v23 }
 0x11d   : > { %v475_v40 = vmul.f32 %v1629_v52, %v465_v38  ;;  %v737_v52 = vsel %vm367_vm4, %v735_v13, %v731_v10 }
 0x11e   : > { %v792_v30 = vadd.f32 %v790_v29, %v770_v11  ;;  %v501_v42 = vpop.permute.xlu0 %500  ;;  %v747_v60 = vmul.f32 %v1616_v44, %v737_v52 }
 0x11f   : > { %v753_v31 = vpop.permute.xlu1 %752  ;;  %v477_v48 = vadd.f32 %v475_v40, %v455_v35 }
 0x120   : > { %v749_v6 = vadd.f32 %v747_v60, %v1660_v17  ;;  %v524_v17 = vld [vmem:[%s1805_s3 + $0x10] sm:$0xff] }
 0x122   : > { %v505_v53 = vpop.permute.xlu0 %504 }
 0x123   : > { %v757_v32 = vpop.permute.xlu1 %756  ;;  %v508_v58 = vsel %vm370_vm7, %v505_v53, %v501_v42 }
 0x124   : > { %v518_v59 = vmul.f32 %v512_v63, %v508_v58  ;;  %v759_v35 = vsel %vm368_vm5, %v757_v32, %v753_v31 }
 0x125   : > { %v769_v34 = vmul.f32 %v1658_v16, %v759_v35  ;;  %v523_v16 = vld [vmem:[%s1805_s3 + $0x8] sm:$0xff] }
 0x126   : > { %v795_v54 = vpop.permute.xlu0 %794  ;;  %v520_v1 = vadd.f32 %v518_v59, %v498_v19 }
 0x127   : > { %v481_v39 = vpop.permute.xlu1 %480  ;;  %v771_v44 = vadd.f32 %v769_v34, %v749_v6 }
 0x12a   : > { %v799_v61 = vpop.permute.xlu0 %798 }
 0x12b   : > { %v485_v5 = vpop.permute.xlu1 %484  ;;  %v802_v3 = vsel %vm370_vm7, %v799_v61, %v795_v54 }
 0x12c   : > { %v487_v46 = vsel %vm369_vm6, %v485_v5, %v481_v39  ;;  %v812_v9 = vmul.f32 %v1675_v47, %v802_v3 }
 0x12d   : > { %v497_v49 = vmul.f32 %v494_v33, %v487_v46 }
 0x12f   : > { %v499_v50 = vadd.f32 %v497_v49, %v477_v48  ;;  %v775_v51 = vpop.permute.xlu1 %774 }
 0x133   : > { %v779_v37 = vpop.permute.xlu1 %778 }
 0x134   : > { %v781_v28 = vsel %vm369_vm6, %v779_v37, %v775_v51 }
 0x135   : > { %v791_v7 = vmul.f32 %v1662_v18, %v781_v28  ;;  %v814_v18 = vadd.f32 %v812_v9, %v792_v30 }
 0x137   : > { %v503_v57 = vpop.permute.xlu1 %502  ;;  %v793_v10 = vadd.f32 %v791_v7, %v771_v44 }
 0x13b   : > { %v507_v45 = vpop.permute.xlu1 %506 }
 0x13c   : > { %v509_v33 = vsel %vm370_vm7, %v507_v45, %v503_v57 }
 0x13d   : > { %v519_v62 = vmul.f32 %v1670_v36, %v509_v33 }
 0x13f   : > { %v797_v0 = vpop.permute.xlu1 %796  ;;  %v521_v63 = vadd.f32 %v519_v62, %v499_v50 }
 0x141   : > { %v1139_v8 = vpack.c.bf16 %v521_v63, %v520_v1 }
 0x143   : > { %v801_v36 = vpop.permute.xlu1 %800  ;;  %1140 = vmatprep.subr.bf16.mxu0 %v1139_v8 }
 0x144   : > { %v803_v41 = vsel %vm370_vm7, %v801_v36, %v797_v0  ;;  %1142 = vmatpush3.bf16.msra.mxu0 %v1139_v8 }
 0x145   : > { %v813_v4 = vmul.f32 %v810_v15, %v803_v41  ;;  %v543_v15 = vpop.permute.xlu0 %542 }
 0x147   : > { %1124 = vmatmul.mubr.msk.f32.vlgmr.msra.gmra.mrb[0].mxu0 %vm550_vm2, %v523_v16  ;;  %v815_v47 = vadd.f32 %v813_v4, %v793_v10  ;;  %v548_v2 = vpop.permute.xlu1 %547 }
 0x148   : > { %1126 = vmatprep.mubr.msk.f32.mxu0 %vm550_vm2, %v524_v17 }
 0x149   : > { %v1143_v11 = vpack.c.bf16 %v815_v47, %v814_v18  ;;  %v842_v31 = vpop.permute.xlu0 %841 }
 0x14b   : > { %1127 = vmatmul.mubr.msk.f32.gmra.mrb[2].mxu0 %vm550_vm2, %v525_v43  ;;  %1144 = vmatprep.subr.bf16.mxu1 %v1143_v11  ;;  %v837_v38 = vpop.permute.xlu1 %836 }
 0x14c   : > { %1146 = vmatpush3.bf16.msra.mxu1 %v1143_v11 }
 0x14d   : > { %v538_v59 = vpop.permute.xlu0 %537 }
 0x14f   : > { %1134 = vmatmul.mubr.msk.f32.vlgmr.msra.gmra.mrb[0].mxu1 %vm550_vm2, %v523_v16  ;;  %v533_v35 = vpop.permute.xlu1 %532 }
 0x150   : > { %1136 = vmatprep.mubr.msk.f32.mxu1 %vm550_vm2, %v524_v17 }
 0x151   : > { %v832_v63 = vpop.permute.xlu0 %831 }
 0x153   : > { %1137 = vmatmul.mubr.msk.f32.gmra.mrb[2].mxu1 %vm550_vm2, %v525_v43  ;;  %v827_v1 = vpop.permute.xlu1 %826 }
 0x21a   : > { %v1125_v12 = vpop.f32.mrb[0].mxu0 }
 0x21b   : > { %v629_v13 = vpop.f32.mrb[1].mxu0  ;;  %v635_v45 = vadd.f32 %v1125_v12, %v538_v59 }
 0x21c   : > { %v630_v60 = vadd.f32 %v629_v13, %v533_v35 }
 0x21e   : > { %v1128_v14 = vpop.f32.mrb[2].mxu0 }
 0x21f   : > { %v645_v56 = vadd.f32 %v1128_v14, %v548_v2  ;;  %v639_v19 = vpop.f32.mrb[3].mxu0 }
 0x220   : > { %v640_v21 = vadd.f32 %v639_v19, %v543_v15 }
 0x221   : > { %v649_v23 = vsub.f32 0.0, %v645_v56 }
 0x222   : > { %v648_v26 = vsub.f32 0.0, %v640_v21  ;;  %v1135_v27 = vpop.f32.mrb[0].mxu1 }
 0x223   : > { %v652_v55 = vmul.f32 1.442695, %v649_v23  ;;  %v922_v29 = vpop.f32.mrb[1].mxu1  ;;  %v928_v3 = vadd.f32 %v1135_v27, %v832_v63 }
 0x224   : > { %v650_v30 = vmul.f32 1.442695, %v648_v26  ;;  %v923_v7 = vadd.f32 %v922_v29, %v827_v1 }
 0x225   : > { %1237 = vpow2.f32 %v652_v55 }
 0x226   : > { %1239 = vpow2.f32 %v650_v30  ;;  %v1138_v32 = vpop.f32.mrb[2].mxu1 }
 0x227   : > { %v938_v39 = vadd.f32 %v1138_v32, %v842_v31  ;;  %v932_v40 = vpop.f32.mrb[3].mxu1 }
 0x228   : > { %v933_v42 = vadd.f32 %v932_v40, %v837_v38 }
 0x229   : > { %v942_v5 = vsub.f32 0.0, %v938_v39 }
 0x22a   : > { %v941_v46 = vsub.f32 0.0, %v933_v42 }
 0x22b   : > { %v945_v48 = vmul.f32 1.442695, %v942_v5 }
 0x22c   : > { %v943_v49 = vmul.f32 1.442695, %v941_v46 }
 0x22d   : > { %1241 = vpow2.f32 %v945_v48 }
 0x22e   : > { %1243 = vpow2.f32 %v943_v49 }
 0x22f   : > { %v1238_v50 = vpop.eup %1237 }
 0x230   : > { %v1240_v51 = vpop.eup %1239  ;;  %v655_v53 = vadd.f32 1.0, %v1238_v50 }
 0x231   : > { %v654_v37 = vadd.f32 1.0, %v1240_v51 }
 0x232   : > { %1245 = vrcp.f32 %v655_v53 }
 0x233   : > { %1247 = vrcp.f32 %v654_v37 }
 0x237   : > { %v1242_v54 = vpop.eup %1241 }
 0x238   : > { %v1244_v57 = vpop.eup %1243  ;;  %v948_v58 = vadd.f32 1.0, %v1242_v54 }
 0x239   : > { %v947_v52 = vadd.f32 1.0, %v1244_v57 }
 0x23a   : > { %1249 = vrcp.f32 %v948_v58 }
 0x23b   : > { %1251 = vrcp.f32 %v947_v52 }
 0x23c   : > { %v1246_v33 = vpop.eup %1245 }
 0x23d   : > { %v1248_v61 = vpop.eup %1247  ;;  %v659_v62 = vmul.f32 %v1246_v33, %v635_v45 }
 0x23e   : > { %v658_v28 = vmul.f32 %v1248_v61, %v630_v60 }
 0x23f   : > { %v661_v34 = vadd.f32 %v659_v62, %v1497_v20 }
 0x240   : > { %v660_v0 = vadd.f32 %v658_v28, %v1504_v22 }
 0x241   : > { %663 = vst [vmem:[%s359_s14 + $0x8] sm:$0xff] %v661_v34 }
 0x242   : > { %662 = vst [vmem:[%s359_s14] sm:$0xff] %v660_v0 }
 0x244   : > { %v1250_v6 = vpop.eup %1249 }
 0x245   : > { %v1252_v8 = vpop.eup %1251  ;;  %v952_v44 = vmul.f32 %v1250_v6, %v928_v3 }
 0x246   : > { %v951_v9 = vmul.f32 %v1252_v8, %v923_v7 }
 0x247   : > { %v954_v20 = vadd.f32 %v1516_v25, %v952_v44 }
 0x248   : > { %v953_v22 = vadd.f32 %v1513_v24, %v951_v9 }
 0x249   : > { %1101 = vst [vmem:[%s359_s14 + $0x18] sm:$0xff] %v954_v20 }
 0x24a   : > { %1100 = vst [vmem:[%s359_s14 + $0x10] sm:$0xff] %v953_v22 }
 0x24b   : > { %1266 = shalt.err (!%p1263_p7)
}
 0x24c   : > { %s1267_s9 = scalar_lea.hbm %s1748_s25, 512  ;;  %s1271_s12 = scalar_lea.hbm %s1807_s5, 1536 }
 0x24d   : > { %p1268_p8 = scmp.ne.s32.totalorder %s1748_s25, %s1267_s9  ;;  %p1272_p12 = scmp.lt.u32.totalorder %s1748_s25, %s1807_s5 }
 0x24e   : > { %p1273_p13 = scmp.lt.u32.totalorder %s1271_s12, %s1267_s9  ;;  %p1275_p1 = scmp.lt.u32.totalorder %s1267_s9, %s1748_s25 }
 0x24f   : > { %p1269_p10 = pnand %p1268_p8, %p1426_p5 }
 0x250   : > { %p1274_p0 = por %p1273_p13, %p1272_p12 }
 0x251   : > { %p1270_p11 = pneg %p1269_p10 }
 0x252   : > { %p1276_p2 = por %p1275_p1, %p1274_p0 }
 0x254   : > { %p1277_p3 = pnand %p1276_p2, %p1270_p11 }
 0x256   : > { %1280 = shalt.err (!%p1277_p3)
}
 0x257   : > { %s1350_s15 = smov 128   ;;  %s1351_s17 = smov 384  }
 0x258   : > { %s1352_s24 = smov 8  }
 0x259   : > { %1147 = dma.vmem_to_hbm [thread:$0]  (%p1426_p5), %s1751_s16, 512, %s1748_s25, %s1756_s21, %s1350_s15, %s1351_s17, %s1352_s24  }
 0x25a PF: > { %p1153_p4 = scmp.ge.s32.totalorder %s1331_s23, 2  ;;  %s989_s10 = sand.u32 1, %s1311_s18  }
 0x25b   : > { %s990_s27 = scalar_lea.sflag [#allocation6], %s989_s10 }
 0x25c   : > { %p1150_p6 = pnand %p1153_p4, %p1437_p9 }
 0x25e   : > { %1306 = dma.done.wait (!%p1150_p6), %s990_s27, 512  }
 0x25f   : > { %1308 = vsyncadd (!%p1150_p6), %s990_s27, 4294966784  ;;  %s18_s23 = sadd.s32 1, %s1331_s23   ;;  %s1811_s18 = smov %s1315_s19 }
 0x260   : > { %p15_p7 = scmp.ge.s32.totalorder %s18_s23, 5   ;;  %s1812_s19 = smov %s1319_s20 }
 0x261   : > { %s1813_s20 = smov %s1435_s6  ;;  %s1814_s21 = smov %s1327_s22 }
 0x262   : > { %s1815_s22 = smov %s1817_s26  ;;  %17 = sbr.rel (!%p15_p7) target bundleno = 4 (0x4), region = 167 }
 0x269   :  { %995 = vsyncpa [#allocation6], 1 }
 0x26a   :  { %997 = vsyncpa [#allocation6 + $0x1], 1 }

</bundles_post_ra>
